<compile_context>
chip_gen: v5e
topology: v5e:2x2
jax: 0.10.0
libtpu: 0.0.40
codegen_flags: <defaults>
</compile_context>

<pallas_src>
import functools
import math

import jax
import jax.numpy as jnp
from jax import lax
from jax.experimental import pallas as pl
from jax.experimental.pallas import tpu as pltpu


def _self_attention_kernel(x_ref, w_ref, b_ref, o_ref, *, s_valid):
    bt, sp, hp = x_ref.shape          # batch-block, padded seq, padded hidden (all static)
    h_out = o_ref.shape[-1]           # true (unpadded) hidden

    # ---- fused QKV projection: one MXU matmul over all bt*sp rows ----
    # bf16 operands, f32 accumulation; bias added in f32 after the accumulate.
    x2 = x_ref[...].reshape(bt * sp, hp)                      # layout-trivial (sp % 8 == 0)
    qkv = jnp.dot(x2, w_ref[...],
                  preferred_element_type=jnp.float32) + b_ref[...]   # (bt*sp, 3*hp) f32
    qkv = qkv.reshape(bt, sp, 3 * hp)

    # 128-aligned lane slices (hp is a multiple of 128). Re-cast MXU operands to bf16.
    q = qkv[..., 0 * hp:1 * hp].astype(jnp.bfloat16)   # 1/sqrt(H) already folded into W_q/b_q
    k = qkv[..., 1 * hp:2 * hp].astype(jnp.bfloat16)
    v = qkv[..., 2 * hp:3 * hp].astype(jnp.bfloat16)

    # ---- scores = (q/sqrt(H)) @ k^T, batched, contracting on hidden (no transpose) ----
    scores = jnp.einsum('bqh,bkh->bqk', q, k,
                        preferred_element_type=jnp.float32)   # (bt, sp, sp) f32

    if s_valid < sp:                                          # static branch: mask padded keys
        key_idx = lax.broadcasted_iota(jnp.int32, (1, 1, sp), 2)
        scores = jnp.where(key_idx < s_valid, scores, -1e30)

    # ---- numerically-stable softmax along keys (all f32: v5e VPU/EUP have no bf16) ----
    scores = scores - jnp.max(scores, axis=-1, keepdims=True)
    p = jnp.exp(scores)
    denom = jnp.sum(p, axis=-1, keepdims=True)
    r = pl.reciprocal(denom, approx=True)                     # EUP slot, ~free next to exp
    r = r * (2.0 - denom * r)                                 # one Newton step -> ~f32 accuracy
    attn = (p * r).astype(jnp.bfloat16)

    # ---- output = attn @ v ; store only the valid :H lanes (no HBM write amplification) ----
    out = jnp.einsum('bqk,bkh->bqh', attn, v,
                     preferred_element_type=jnp.float32)      # (bt, sp, hp) f32
    o_ref[...] = out[..., :h_out].astype(o_ref.dtype)


def _vmem_limit_bytes():
    """Per-generation scoped-VMEM budget (headroom below physical capacity)."""
    try:
        cap = pltpu.get_tpu_info().vmem_capacity_bytes
    except Exception:
        cap = 64 * 1024 * 1024          # conservative fallback, valid on every generation
    if cap <= 64 * 1024 * 1024:         # v7x-class: 64 MiB per TensorCore
        return 48 * 1024 * 1024
    return 96 * 1024 * 1024             # v5e / v6e: 128 MiB physical


def self_attention(x, wq, bq, wk, bk, wv, bv):
    """x: (B, S, H) f32.  wq/wk/wv: (H_in, H_out) (already transposed).  b*: (H,)."""
    B, S, H = x.shape
    scale = 1.0 / math.sqrt(H)

    Hp = -(-H // 128) * 128             # lane-dense hidden
    Sp = -(-S // 8) * 8                 # sublane-aligned sequence
    pad_h, pad_s = Hp - H, Sp - S

    # Fold the softmax scale into the Q projection (off the kernel hot path).
    wq_s, bq_s = wq * scale, bq * scale

    pad_w = lambda w: jnp.pad(w, ((0, pad_h), (0, pad_h)))
    pad_b = lambda b: jnp.pad(b, (0, pad_h))

    # Fused QKV weight (bf16 MXU operand) / bias (f32, added after f32 accumulation).
    w_qkv = jnp.concatenate([pad_w(wq_s), pad_w(wk), pad_w(wv)],
                            axis=1).astype(jnp.bfloat16)                       # (Hp, 3*Hp)
    b_qkv = jnp.concatenate([pad_b(bq_s), pad_b(bk), pad_b(bv)]
                            ).reshape(1, 3 * Hp).astype(jnp.float32)
    x_p = jnp.pad(x, ((0, 0), (0, pad_s), (0, pad_h))).astype(jnp.bfloat16)

    vmem_limit = _vmem_limit_bytes()

    # ---- batch packing: ~512 MXU rows / step, >=2 grid steps, fit the VMEM budget ----
    rows_target = 512
    bt = max(1, min(B, rows_target // max(Sp, 1)))
    if B >= 2:
        bt = min(bt, B // 2)            # keep >=2 "parallel" steps so both v7x TCs get work

    def step_bytes(bt_):
        return (2 * bt_ * Sp * Hp * 2            # x block, double-buffered bf16
                + 2 * bt_ * Sp * H * 4           # out block, double-buffered f32
                + Hp * 3 * Hp * 2 + 3 * Hp * 4   # fused weight / bias (single-buffered)
                + 2 * bt_ * Sp * 3 * Hp * 4      # qkv + q/k/v intermediates (f32-equivalent)
                + 2 * bt_ * Sp * Sp * 4)         # scores + exp(scores), f32

    while bt > 1 and (B % bt or step_bytes(bt) > vmem_limit):
        bt -= 1

    def call(single_buffer_weights):
        if single_buffer_weights:
            w_spec = pl.BlockSpec((Hp, 3 * Hp), lambda b: (0, 0),
                                  pipeline_mode=pl.Buffered(1))
            b_spec = pl.BlockSpec((1, 3 * Hp), lambda b: (0, 0),
                                  pipeline_mode=pl.Buffered(1))
        else:
            w_spec = pl.BlockSpec((Hp, 3 * Hp), lambda b: (0, 0))
            b_spec = pl.BlockSpec((1, 3 * Hp), lambda b: (0, 0))
        return pl.pallas_call(
            functools.partial(_self_attention_kernel, s_valid=S),
            out_shape=jax.ShapeDtypeStruct((B, Sp, H), x.dtype),
            grid_spec=pltpu.PrefetchScalarGridSpec(
                num_scalar_prefetch=0,
                grid=(B // bt,),
                in_specs=[
                    pl.BlockSpec((bt, Sp, Hp), lambda b: (b, 0, 0)),  # x: bt batches per step
                    w_spec,                                           # fused QKV weight
                    b_spec,                                           # fused QKV bias
                ],
                out_specs=pl.BlockSpec((bt, Sp, H), lambda b: (b, 0, 0)),
            ),
            compiler_params=pltpu.CompilerParams(
                dimension_semantics=("parallel",),   # batch axis shards across TCs on v7x
                vmem_limit_bytes=vmem_limit,
            ),
        )(x_p, w_qkv, b_qkv)

    try:
        out = call(True)     # grid-invariant weight/bias single-buffered (halves their VMEM)
    except Exception:
        out = call(False)    # this jax doesn't accept Buffered(1): default double-buffering

    return out[:, :S, :] if pad_s else out


def reference_self_attention(x, wq, bq, wk, bk, wv, bv):
    """Pure-JAX f32 reference mirroring the PyTorch forward."""
    q = x @ wq + bq
    k = x @ wk + bk
    v = x @ wv + bv
    scores = jnp.einsum("bqh,bkh->bqk", q, k) / math.sqrt(x.shape[-1])
    attn = jax.nn.softmax(scores, axis=-1)
    return jnp.einsum("bqk,bkh->bqh", attn, v)


def _init_linear_params(key, hidden_dim):
    """PyTorch nn.Linear default init (uniform +-1/sqrt(fan_in)); returns (in, out) layout."""
    bound = 1.0 / math.sqrt(hidden_dim)
    kw, kb = jax.random.split(key)
    w = jax.random.uniform(kw, (hidden_dim, hidden_dim), jnp.float32, -bound, bound)
    b = jax.random.uniform(kb, (hidden_dim,), jnp.float32, -bound, bound)
    return w, b


if __name__ == "__main__":
    B, S, H = 2, 8, 32   # batch=2, seq=8, hidden=32

    key = jax.random.PRNGKey(0)
    kx, kq, kk, kv = jax.random.split(key, 4)

    x = jax.random.normal(kx, (B, S, H), jnp.float32)
    wq, bq = _init_linear_params(kq, H)
    wk, bk = _init_linear_params(kk, H)
    wv, bv = _init_linear_params(kv, H)

    out = jax.block_until_ready(self_attention(x, wq, bq, wk, bk, wv, bv))
    ref = reference_self_attention(x, wq, bq, wk, bk, wv, bv)

    assert out.shape == (B, S, H)
    assert out.dtype == x.dtype
    # bf16 MXU operands (per the perf review) -> ~1e-2 relative agreement vs the f32 reference;
    # the softmax reciprocal uses approx + one Newton step, so it is not the limiting error.
    assert jnp.allclose(out, ref, atol=2e-2, rtol=2e-2), "mismatch vs reference"

    print("KERNEL_OK")
</pallas_src>

<mosaic_0001>
module attributes {stable_mosaic.version = 11 : i64} {
  func.func @_self_attention_kernel(%arg0: i32, %arg1: memref<1x8x128xbf16, #tpu.memory_space<vmem>>, %arg2: memref<128x384xbf16, #tpu.memory_space<vmem>>, %arg3: memref<1x384xf32, #tpu.memory_space<vmem>>, %arg4: memref<1x8x32xf32, #tpu.memory_space<vmem>>) attributes {dimension_semantics = [#tpu.dimension_semantics<parallel>], iteration_bounds = array<i64: 2>, scalar_prefetch = 0 : i64, scratch_operands = 0 : i64, tpu.core_type = #tpu.core_type<tc>, window_params = [{transform_indices = @transform_0, window_bounds = array<i64: 1, 8, 128>}, {pipeline_mode = #tpu.pipeline_mode<synchronous>, transform_indices = @transform_1, window_bounds = array<i64: 128, 384>}, {pipeline_mode = #tpu.pipeline_mode<synchronous>, transform_indices = @transform_2, window_bounds = array<i64: 1, 384>}, {transform_indices = @transform_3, window_bounds = array<i64: 1, 8, 32>}]} {
    %c0 = arith.constant 0 : index
    %c0_0 = arith.constant 0 : index
    %c0_1 = arith.constant 0 : index
    %0 = vector.load %arg1[%c0, %c0_0, %c0_1] : memref<1x8x128xbf16, #tpu.memory_space<vmem>>, vector<1x8x128xbf16>
    %1 = vector.shape_cast %0 : vector<1x8x128xbf16> to vector<8x128xbf16>
    %c0_2 = arith.constant 0 : index
    %c0_3 = arith.constant 0 : index
    %2 = vector.load %arg2[%c0_2, %c0_3] : memref<128x384xbf16, #tpu.memory_space<vmem>>, vector<128x384xbf16>
    %cst = arith.constant dense<0.000000e+00> : vector<8x384xf32>
    %3 = tpu.matmul %1, %2, %cst {dimension_numbers = #tpu.dot_dimension_numbers<[1], [0], [0], [1], [0, 0, 1, 1], [], []>} : vector<8x128xbf16>, vector<128x384xbf16>, vector<8x384xf32> -> vector<8x384xf32>
    %c0_4 = arith.constant 0 : index
    %c0_5 = arith.constant 0 : index
    %4 = vector.load %arg3[%c0_4, %c0_5] : memref<1x384xf32, #tpu.memory_space<vmem>>, vector<1x384xf32>
    %5 = vector.broadcast %4 : vector<1x384xf32> to vector<8x384xf32>
    %6 = arith.addf %3, %5 : vector<8x384xf32>
    %7 = vector.shape_cast %6 : vector<8x384xf32> to vector<1x8x384xf32>
    %8 = vector.extract_strided_slice %7 {offsets = [0, 0, 0], sizes = [1, 8, 128], strides = [1, 1, 1]} : vector<1x8x384xf32> to vector<1x8x128xf32>
    %9 = arith.truncf %8 : vector<1x8x128xf32> to vector<1x8x128xbf16>
    %10 = vector.extract_strided_slice %7 {offsets = [0, 0, 128], sizes = [1, 8, 128], strides = [1, 1, 1]} : vector<1x8x384xf32> to vector<1x8x128xf32>
    %11 = arith.truncf %10 : vector<1x8x128xf32> to vector<1x8x128xbf16>
    %12 = vector.extract_strided_slice %7 {offsets = [0, 0, 256], sizes = [1, 8, 128], strides = [1, 1, 1]} : vector<1x8x384xf32> to vector<1x8x128xf32>
    %13 = arith.truncf %12 : vector<1x8x128xf32> to vector<1x8x128xbf16>
    "tpu.trace_start"() <{level = 10 : i32, message = "bqh,bkh->bqk"}> : () -> ()
    %cst_6 = arith.constant dense<0.000000e+00> : vector<1x8x8xf32>
    %14 = tpu.matmul %9, %11, %cst_6 {dimension_numbers = #tpu.dot_dimension_numbers<[2], [2], [1], [1], [0, 0, 0, 1, 1, 1], [0], [0]>} : vector<1x8x128xbf16>, vector<1x8x128xbf16>, vector<1x8x8xf32> -> vector<1x8x8xf32>
    "tpu.trace_stop"() : () -> ()
    %cst_7 = arith.constant dense<0xFF800000> : vector<1x8xf32>
    %15 = vector.multi_reduction <maximumf>, %14, %cst_7 [2] : vector<1x8x8xf32> to vector<1x8xf32>
    %16 = vector.shape_cast %15 : vector<1x8xf32> to vector<1x8x1xf32>
    %17 = vector.broadcast %16 : vector<1x8x1xf32> to vector<1x8x8xf32>
    %18 = arith.subf %14, %17 : vector<1x8x8xf32>
    %19 = math.exp %18 : vector<1x8x8xf32>
    %cst_8 = arith.constant dense<0.000000e+00> : vector<1x8xf32>
    %20 = vector.multi_reduction <add>, %19, %cst_8 [2] : vector<1x8x8xf32> to vector<1x8xf32>
    %21 = vector.shape_cast %20 : vector<1x8xf32> to vector<1x8x1xf32>
    %22 = tpu.reciprocal %21 {approx = true} : vector<1x8x1xf32> -> vector<1x8x1xf32>
    %23 = arith.mulf %21, %22 : vector<1x8x1xf32>
    %cst_9 = arith.constant 2.000000e+00 : f32
    %24 = vector.broadcast %cst_9 : f32 to vector<1x8x1xf32>
    %25 = arith.subf %24, %23 : vector<1x8x1xf32>
    %26 = arith.mulf %22, %25 : vector<1x8x1xf32>
    %27 = vector.broadcast %26 : vector<1x8x1xf32> to vector<1x8x8xf32>
    %28 = arith.mulf %19, %27 : vector<1x8x8xf32>
    %29 = arith.truncf %28 : vector<1x8x8xf32> to vector<1x8x8xbf16>
    "tpu.trace_start"() <{level = 10 : i32, message = "bqk,bkh->bqh"}> : () -> ()
    %cst_10 = arith.constant dense<0.000000e+00> : vector<1x8x128xf32>
    %30 = tpu.matmul %29, %13, %cst_10 {dimension_numbers = #tpu.dot_dimension_numbers<[2], [1], [1], [2], [0, 0, 0, 1, 1, 2], [0], [0]>} : vector<1x8x8xbf16>, vector<1x8x128xbf16>, vector<1x8x128xf32> -> vector<1x8x128xf32>
    "tpu.trace_stop"() : () -> ()
    %31 = vector.extract_strided_slice %30 {offsets = [0, 0, 0], sizes = [1, 8, 32], strides = [1, 1, 1]} : vector<1x8x128xf32> to vector<1x8x32xf32>
    %c0_11 = arith.constant 0 : index
    %c0_12 = arith.constant 0 : index
    %c0_13 = arith.constant 0 : index
    %32 = vector.load %arg4[%c0_11, %c0_12, %c0_13] : memref<1x8x32xf32, #tpu.memory_space<vmem>>, vector<1x8x32xf32>
    tpu.vector_store %arg4[%c0_11, %c0_12, %c0_13], %31 {strides = array<i32>} : memref<1x8x32xf32, #tpu.memory_space<vmem>>, vector<1x8x32xf32>,
    return
  }
  func.func @transform_0(%arg0: i32) -> (i32, i32, i32) {
    %c0_i32 = arith.constant 0 : i32
    %c0_i32_0 = arith.constant 0 : i32
    %c0_i32_1 = arith.constant 0 : i32
    return %arg0, %c0_i32, %c0_i32_0 : i32, i32, i32
  }
  func.func @transform_1(%arg0: i32) -> (i32, i32) {
    %c0_i32 = arith.constant 0 : i32
    %c0_i32_0 = arith.constant 0 : i32
    %c0_i32_1 = arith.constant 0 : i32
    return %c0_i32, %c0_i32_0 : i32, i32
  }
  func.func @transform_2(%arg0: i32) -> (i32, i32) {
    %c0_i32 = arith.constant 0 : i32
    %c0_i32_0 = arith.constant 0 : i32
    %c0_i32_1 = arith.constant 0 : i32
    return %c0_i32, %c0_i32_0 : i32, i32
  }
  func.func @transform_3(%arg0: i32) -> (i32, i32, i32) {
    %c0_i32 = arith.constant 0 : i32
    %c0_i32_0 = arith.constant 0 : i32
    %c0_i32_1 = arith.constant 0 : i32
    return %arg0, %c0_i32, %c0_i32_0 : i32, i32, i32
  }
}

module attributes {stable_mosaic.version = 11 : i64} {
  func.func @_self_attention_kernel(%arg0: i32, %arg1: memref<1x8x128xbf16, #tpu.memory_space<vmem>>, %arg2: memref<128x384xbf16, #tpu.memory_space<vmem>>, %arg3: memref<1x384xf32, #tpu.memory_space<vmem>>, %arg4: memref<1x8x32xf32, #tpu.memory_space<vmem>>) attributes {dimension_semantics = [#tpu.dimension_semantics<parallel>], iteration_bounds = array<i64: 2>, scalar_prefetch = 0 : i64, scratch_operands = 0 : i64, tpu.core_type = #tpu.core_type<tc>, window_params = [{transform_indices = @transform_0, window_bounds = array<i64: 1, 8, 128>}, {pipeline_mode = #tpu.pipeline_mode<synchronous>, transform_indices = @transform_1, window_bounds = array<i64: 128, 384>}, {pipeline_mode = #tpu.pipeline_mode<synchronous>, transform_indices = @transform_2, window_bounds = array<i64: 1, 384>}, {transform_indices = @transform_3, window_bounds = array<i64: 1, 8, 32>}]} {
    %c0 = arith.constant 0 : index
    %c0_0 = arith.constant 0 : index
    %c0_1 = arith.constant 0 : index
    %0 = vector.load %arg1[%c0, %c0_0, %c0_1] : memref<1x8x128xbf16, #tpu.memory_space<vmem>>, vector<1x8x128xbf16>
    %1 = vector.shape_cast %0 : vector<1x8x128xbf16> to vector<8x128xbf16>
    %c0_2 = arith.constant 0 : index
    %c0_3 = arith.constant 0 : index
    %2 = vector.load %arg2[%c0_2, %c0_3] : memref<128x384xbf16, #tpu.memory_space<vmem>>, vector<128x384xbf16>
    %cst = arith.constant dense<0.000000e+00> : vector<8x384xf32>
    %3 = tpu.matmul %1, %2, %cst {dimension_numbers = #tpu.dot_dimension_numbers<[1], [0], [0], [1], [0, 0, 1, 1], [], []>} : vector<8x128xbf16>, vector<128x384xbf16>, vector<8x384xf32> -> vector<8x384xf32>
    %c0_4 = arith.constant 0 : index
    %c0_5 = arith.constant 0 : index
    %4 = vector.load %arg3[%c0_4, %c0_5] : memref<1x384xf32, #tpu.memory_space<vmem>>, vector<1x384xf32>
    %5 = vector.broadcast %4 : vector<1x384xf32> to vector<8x384xf32>
    %6 = arith.addf %3, %5 : vector<8x384xf32>
    %7 = vector.shape_cast %6 : vector<8x384xf32> to vector<1x8x384xf32>
    %8 = vector.extract_strided_slice %7 {offsets = [0, 0, 0], sizes = [1, 8, 128], strides = [1, 1, 1]} : vector<1x8x384xf32> to vector<1x8x128xf32>
    %9 = arith.truncf %8 : vector<1x8x128xf32> to vector<1x8x128xbf16>
    %10 = vector.extract_strided_slice %7 {offsets = [0, 0, 128], sizes = [1, 8, 128], strides = [1, 1, 1]} : vector<1x8x384xf32> to vector<1x8x128xf32>
    %11 = arith.truncf %10 : vector<1x8x128xf32> to vector<1x8x128xbf16>
    %12 = vector.extract_strided_slice %7 {offsets = [0, 0, 256], sizes = [1, 8, 128], strides = [1, 1, 1]} : vector<1x8x384xf32> to vector<1x8x128xf32>
    %13 = arith.truncf %12 : vector<1x8x128xf32> to vector<1x8x128xbf16>
    "tpu.trace_start"() <{level = 10 : i32, message = "bqh,bkh->bqk"}> : () -> ()
    %cst_6 = arith.constant dense<0.000000e+00> : vector<1x8x8xf32>
    %14 = tpu.matmul %9, %11, %cst_6 {dimension_numbers = #tpu.dot_dimension_numbers<[2], [2], [1], [1], [0, 0, 0, 1, 1, 1], [0], [0]>} : vector<1x8x128xbf16>, vector<1x8x128xbf16>, vector<1x8x8xf32> -> vector<1x8x8xf32>
    "tpu.trace_stop"() : () -> ()
    %cst_7 = arith.constant dense<0xFF800000> : vector<1x8xf32>
    %15 = vector.multi_reduction <maximumf>, %14, %cst_7 [2] : vector<1x8x8xf32> to vector<1x8xf32>
    %16 = vector.shape_cast %15 : vector<1x8xf32> to vector<1x8x1xf32>
    %17 = vector.broadcast %16 : vector<1x8x1xf32> to vector<1x8x8xf32>
    %18 = arith.subf %14, %17 : vector<1x8x8xf32>
    %19 = math.exp %18 : vector<1x8x8xf32>
    %cst_8 = arith.constant dense<0.000000e+00> : vector<1x8xf32>
    %20 = vector.multi_reduction <add>, %19, %cst_8 [2] : vector<1x8x8xf32> to vector<1x8xf32>
    %21 = vector.shape_cast %20 : vector<1x8xf32> to vector<1x8x1xf32>
    %22 = tpu.reciprocal %21 {approx = true} : vector<1x8x1xf32> -> vector<1x8x1xf32>
    %23 = arith.mulf %21, %22 : vector<1x8x1xf32>
    %cst_9 = arith.constant 2.000000e+00 : f32
    %24 = vector.broadcast %cst_9 : f32 to vector<1x8x1xf32>
    %25 = arith.subf %24, %23 : vector<1x8x1xf32>
    %26 = arith.mulf %22, %25 : vector<1x8x1xf32>
    %27 = vector.broadcast %26 : vector<1x8x1xf32> to vector<1x8x8xf32>
    %28 = arith.mulf %19, %27 : vector<1x8x8xf32>
    %29 = arith.truncf %28 : vector<1x8x8xf32> to vector<1x8x8xbf16>
    "tpu.trace_start"() <{level = 10 : i32, message = "bqk,bkh->bqh"}> : () -> ()
    %cst_10 = arith.constant dense<0.000000e+00> : vector<1x8x128xf32>
    %30 = tpu.matmul %29, %13, %cst_10 {dimension_numbers = #tpu.dot_dimension_numbers<[2], [1], [1], [2], [0, 0, 0, 1, 1, 2], [0], [0]>} : vector<1x8x8xbf16>, vector<1x8x128xbf16>, vector<1x8x128xf32> -> vector<1x8x128xf32>
    "tpu.trace_stop"() : () -> ()
    %31 = vector.extract_strided_slice %30 {offsets = [0, 0, 0], sizes = [1, 8, 32], strides = [1, 1, 1]} : vector<1x8x128xf32> to vector<1x8x32xf32>
    %c0_11 = arith.constant 0 : index
    %c0_12 = arith.constant 0 : index
    %c0_13 = arith.constant 0 : index
    %32 = vector.load %arg4[%c0_11, %c0_12, %c0_13] : memref<1x8x32xf32, #tpu.memory_space<vmem>>, vector<1x8x32xf32>
    tpu.vector_store %arg4[%c0_11, %c0_12, %c0_13], %31 {strides = array<i32>} : memref<1x8x32xf32, #tpu.memory_space<vmem>>, vector<1x8x32xf32>,
    return
  }
  func.func @transform_0(%arg0: i32) -> (i32, i32, i32) {
    %c0_i32 = arith.constant 0 : i32
    %c0_i32_0 = arith.constant 0 : i32
    %c0_i32_1 = arith.constant 0 : i32
    return %arg0, %c0_i32, %c0_i32_0 : i32, i32, i32
  }
  func.func @transform_1(%arg0: i32) -> (i32, i32) {
    %c0_i32 = arith.constant 0 : i32
    %c0_i32_0 = arith.constant 0 : i32
    %c0_i32_1 = arith.constant 0 : i32
    return %c0_i32, %c0_i32_0 : i32, i32
  }
  func.func @transform_2(%arg0: i32) -> (i32, i32) {
    %c0_i32 = arith.constant 0 : i32
    %c0_i32_0 = arith.constant 0 : i32
    %c0_i32_1 = arith.constant 0 : i32
    return %c0_i32, %c0_i32_0 : i32, i32
  }
  func.func @transform_3(%arg0: i32) -> (i32, i32, i32) {
    %c0_i32 = arith.constant 0 : i32
    %c0_i32_0 = arith.constant 0 : i32
    %c0_i32_1 = arith.constant 0 : i32
    return %arg0, %c0_i32, %c0_i32_0 : i32, i32, i32
  }
}

</mosaic_0001>

<bundles_post_ra>
// kernel: tpu_custom_call.1
= control target key start
LH: loop header
LB: loop body
LE: loop exit
PB: predicated region body
PF: predicated region fallthrough
CT: control target
= control target key end

     0   :  { %8 = vsyncpa [#allocation3], 0  ;;  %s1135_s0 = inlined_call_operand.hbm [shape: bf16[2,8,128], index: 0, kind: input, shape index: {}]   ;;  %s1136_s1 = inlined_call_operand.hbm [shape: bf16[128,384], index: 1, kind: input, shape index: {}]   ;;  %s1137_s2 = inlined_call_operand.hbm [shape: f32[1,384], index: 2, kind: input, shape index: {}]   ;;  %s1138_s3 = inlined_call_operand.hbm [shape: f32[2,8,32], index: 3, kind: output, shape index: {}]  }
   0x1   :  { %10 = vsyncpa [#allocation3 + $0x1], 0 }
   0x2   :  { %11 = vsyncpa [#allocation6], 0 }
   0x3   :  { %12 = vsyncpa [#allocation4], 0 }
   0x4   :  { %14 = vsyncpa [#allocation4 + $0x1], 0  ;;  %s983_s12 = smov 0   ;;  %s985_s13 = smov 0  }
   0x5   :  { %s987_s14 = smov 0   ;;  %s989_s15 = smov 0  }
   0x6 LB: > { %s130_s18 = sshll.u32 %s1136_s1, 4  ;;  %s1007_s19 = sadd.s32 4294967295, %s957_s15   ;;  %s957_s15 = sphi %s989_s15, %s1149_s15   ;;  %s953_s14 = sphi %s987_s14, %s1148_s14   ;;  %s949_s13 = sphi %s985_s13, %s1147_s13   ;;  %s945_s12 = sphi %s983_s12, %s1146_s12   ;;  %s131_s18 = int_to_ptr.hbm [resolvable:$true] %s130_s18 }
   0x7   : > { %p588_p0 = scmp.ge.s32.totalorder %s957_s15, 1  ;;  %p41_p1 = scmp.eq.s32.totalorder %s1007_s19, 0 }
   0x8   : > { %p119_p2 = scmp.lt.s32.totalorder %s957_s15, 3  ;;  %s959_s21 = smov [#allocation5]  }
   0x9   : > { %s132_s22 = sshll.u32 %s959_s21, 4  ;;  %s145_s25 = sshll.u32 %s1137_s2, 4  ;;  %s133_s22 = int_to_ptr.vmem [resolvable:$true] %s132_s22  ;;  %s146_s25 = int_to_ptr.hbm [resolvable:$true] %s145_s25 }
   0xa   : > { %p1012_p3 = pnand %p588_p0, %p119_p2  ;;  %s960_s26 = smov [#allocation7]  }
   0xb   : > { %s147_s27 = sshll.u32 %s960_s26, 4  ;;  %s961_s28 = smov 192   ;;  %s148_s27 = int_to_ptr.vmem [resolvable:$true] %s147_s27 }
   0xc   : > { %p736_p4 = pneg %p1012_p3  ;;  %s962_s29 = smov 12  }
   0xd   : > { %s587_s30 = sadd.s32 4294967294, %s957_s15   ;;  %s1026_s4 = sadd.s32 1, %s957_s15  }
   0xe   : > { %p737_p6 = pnand %p736_p4, %p41_p1  ;;  %s24_s5 = ssub.s32 %s957_s15, %s1026_s4 }
   0xf   : > { %s27_s6 = sadd.s32 1, %s953_s14  ;;  %p25_p7 = scmp.eq.s32.totalorder %s24_s5, 0 }
  0x10   : > { %739 = dma.hbm_to_vmem [thread:$0]  (!%p737_p6), %s131_s18, 3072, %s133_s22, [#allocation6], %s961_s28, %s961_s28, %s962_s29  }
  0x11   : > { %742 = dma.hbm_to_vmem [thread:$0]  (!%p737_p6), %s146_s25, 48, %s148_s27, [#allocation6]  }
  0x12   : > { %p34_p8 = scmp.ne.s32.totalorder %s953_s14, %s949_s13  ;;  %p35_p9 = scmp.eq.s32.totalorder %s957_s15, 0 }
  0x13   : > { %p40_p10 = scmp.ne.s32.totalorder %s949_s13, %s945_s12  ;;  %p106_p13 = scmp.eq.s32.totalorder %s1007_s19, 1 }
  0x14   : > { %s1037_s7 = scalar_select %p25_p7, %s953_s14, %s27_s6  }
  0x15   : > { %p1039_p11 = por %p35_p9, %p34_p8  ;;  %p1045_p12 = por %p41_p1, %p40_p10 }
  0x16   : > { %p112_p0 = scmp.eq.s32.totalorder %s587_s30, 1  ;;  %p753_p2 = scmp.lt.s32.totalorder %s957_s15, 2 }
  0x17   : > { %s158_s10 = sand.u32 1, %s953_s14   ;;  %p1052_p4 = por %p106_p13, %p34_p8 }
  0x18   : > { %p1056_p6 = por %p112_p0, %p40_p10  ;;  %s592_s17 = sshll.u32 %s158_s10, 2 }
  0x19   : > { %s593_s18 = sshll.u32 %s957_s15, 2  ;;  %s162_s24 = scalar_lea.vmem [#allocation2], %s592_s17 }
  0x1a   : > { %s166_s23 = scalar_lea.hbm %s1135_s0, %s593_s18  ;;  %s170_s25 = sshll.u32 %s162_s24, 4  ;;  %s171_s25 = int_to_ptr.vmem [resolvable:$true] %s170_s25 }
  0x1b   : > { %s168_s26 = sshll.u32 %s166_s23, 4  ;;  %p1066_p7 = pnand %p753_p2, %p1039_p11  ;;  %s169_s26 = int_to_ptr.hbm [resolvable:$true] %s168_s26 }
  0x1c   : > { %s159_s28 = scalar_lea.sflag [#allocation3], %s158_s10  ;;  %s857_s29 = sshra.s32 %s169_s26, 4  ;;  %s858_s29 = int_to_ptr.hbm [resolvable:$true] %s857_s29 }
  0x1d   : > { %s859_s30 = scalar_lea.hbm %s858_s29, 4  ;;  %p861_p9 = pneg %p1066_p7 }
  0x1e   : > { %p860_p8 = scmp.ne.s32.totalorder %s858_s29, %s859_s30  ;;  %s864_s17 = scalar_lea.hbm %s1135_s0, 8 }
  0x1f   : > { %p865_p11 = scmp.lt.s32.totalorder %s858_s29, %s1135_s0  ;;  %p866_p0 = scmp.lt.s32.totalorder %s864_s17, %s859_s30 }
  0x20   : > { %p862_p10 = pnand %p861_p9, %p860_p8 }
  0x21   : > { %p867_p2 = por %p866_p0, %p865_p11 }
  0x22   : > { %p863_p13 = pneg %p862_p10 }
  0x24   : > { %p868_p5 = pnand %p867_p2, %p863_p13 }
  0x26   : > { %871 = shalt.err (!%p868_p5)
}
  0x27   : > { %746 = dma.hbm_to_vmem [thread:$0]  (!%p1066_p7), %s169_s26, 64, %s171_s25, %s159_s28  }
  0x28   : > { %179 = sbr.rel (%p1012_p3) target bundleno = 754 (0x2f2), region = 32  ;;  %s1083_s10 = sand.u32 (!%p1012_p3), 1, %s949_s13  }
  0x29   : > { %s595_s21 = sshll.u32 (!%p1012_p3), %s1083_s10, 2  ;;  %s182_s22 = scalar_lea.sflag (!%p1012_p3), [#allocation3], %s1083_s10 }
  0x2a   : > { %s1087_s23 = scalar_lea.vmem (!%p1012_p3), [#allocation2], %s595_s21 }
  0x2d   : > { %932 = dma.done.wait (%p1045_p12), %s182_s22, 64  }
  0x2e   : > { %934 = vsyncadd (%p1045_p12), %s182_s22, 4294967232 }
  0x2f   : > { %936 = dma.done.wait (%p41_p1), [#allocation6], 3120  }
  0x30   : > { %938 = vsyncadd (%p41_p1), [#allocation6], 4294964176  ;;  %v685_v0 = vld [vmem:[#allocation5 + $0xa8] sm:$0xf]  ;;  %v722_v1 = vld [vmem:[#allocation5 + $0xb0] sm:$0xf0] }
  0x31   : > { %v721_v2 = vld [vmem:[#allocation5 + $0xac] sm:$0xf]  ;;  %v686_v3 = vor.u32 %v722_v1, %v685_v0  ;;  %v687_v4 = vld [vmem:[#allocation5 + $0xb4] sm:$0xf0]  ;;  %v673_v5 = vld [vmem:[#allocation5 + $0x90] sm:$0xf] }
  0x32   : > { %v719_v6 = vld [vmem:[#allocation5 + $0x98] sm:$0xf0]  ;;  %v690_v7 = vor.u32 %v721_v2, %v687_v4  ;;  %v718_v8 = vld [vmem:[#allocation5 + $0x94] sm:$0xf]  ;;  %v675_v9 = vld [vmem:[#allocation5 + $0x9c] sm:$0xf0] }
  0x33   : > { %389 = vmatpush.bf16.msra.mxu0 %v686_v3  ;;  %v674_v10 = vor.u32 %v719_v6, %v673_v5  ;;  %v678_v11 = vor.u32 %v718_v8, %v675_v9  ;;  %v661_v12 = vld [vmem:[#allocation5 + $0x78] sm:$0xf]  ;;  %v716_v13 = vld [vmem:[#allocation5 + $0x80] sm:$0xf0]  ;;  %v715_v14 = vld [vmem:[#allocation5 + $0x7c] sm:$0xf] }
  0x34   : > { %402 = vmatpush.bf16.msra.mxu1 %v690_v7  ;;  %v663_v15 = vld [vmem:[#allocation5 + $0x84] sm:$0xf0]  ;;  %v662_v16 = vor.u32 %v716_v13, %v661_v12  ;;  %v649_v18 = vld [vmem:[#allocation5 + $0x60] sm:$0xf]  ;;  %v713_v19 = vld [vmem:[#allocation5 + $0x68] sm:$0xf0] }
  0x35   : > { %v666_v17 = vor.u32 %v715_v14, %v663_v15  ;;  %v712_v20 = vld [vmem:[#allocation5 + $0x64] sm:$0xf]  ;;  %v651_v21 = vld [vmem:[#allocation5 + $0x6c] sm:$0xf0]  ;;  %v650_v22 = vor.u32 %v713_v19, %v649_v18  ;;  %v637_v24 = vld [vmem:[#allocation5 + $0x48] sm:$0xf] }
  0x36   : > { %v654_v23 = vor.u32 %v712_v20, %v651_v21  ;;  %v710_v25 = vld [vmem:[#allocation5 + $0x50] sm:$0xf0]  ;;  %v709_v26 = vld [vmem:[#allocation5 + $0x4c] sm:$0xf]  ;;  %v639_v27 = vld [vmem:[#allocation5 + $0x54] sm:$0xf0] }
  0x37   : > { %390 = vmatpush.bf16.msra.mxu0 %v674_v10  ;;  %v638_v28 = vor.u32 %v710_v25, %v637_v24  ;;  %v642_v29 = vor.u32 %v709_v26, %v639_v27  ;;  %v625_v30 = vld [vmem:[#allocation5 + $0x30] sm:$0xf]  ;;  %v707_v31 = vld [vmem:[#allocation5 + $0x38] sm:$0xf0]  ;;  %v706_v32 = vld [vmem:[#allocation5 + $0x34] sm:$0xf] }
  0x38   : > { %403 = vmatpush.bf16.msra.mxu1 %v678_v11  ;;  %v627_v33 = vld [vmem:[#allocation5 + $0x3c] sm:$0xf0]  ;;  %v626_v34 = vor.u32 %v707_v31, %v625_v30  ;;  %v613_v36 = vld [vmem:[#allocation5 + $0x18] sm:$0xf]  ;;  %v704_v37 = vld [vmem:[#allocation5 + $0x20] sm:$0xf0] }
  0x39   : > { %v630_v35 = vor.u32 %v706_v32, %v627_v33  ;;  %v703_v38 = vld [vmem:[#allocation5 + $0x1c] sm:$0xf]  ;;  %v615_v39 = vld [vmem:[#allocation5 + $0x24] sm:$0xf0]  ;;  %v614_v40 = vor.u32 %v704_v37, %v613_v36  ;;  %v601_v42 = vld [vmem:[#allocation5] sm:$0xf] }
  0x3a   : > { %v618_v41 = vor.u32 %v703_v38, %v615_v39  ;;  %v701_v43 = vld [vmem:[#allocation5 + $0x8] sm:$0xf0]  ;;  %v700_v44 = vld [vmem:[#allocation5 + $0x4] sm:$0xf]  ;;  %v603_v45 = vld [vmem:[#allocation5 + $0xc] sm:$0xf0] }
  0x3b   : > { %391 = vmatpush.bf16.msra.mxu0 %v662_v16  ;;  %v602_v46 = vor.u32 %v701_v43, %v601_v42  ;;  %v606_v47 = vor.u32 %v700_v44, %v603_v45  ;;  %v220_v48 = vld [vmem:[%s1087_s23] sm:$0xf]  ;;  %v253_v49 = vld [vmem:[#allocation7] sm:$0x7]  ;;  %v693_v60 = vld [vmem:[#allocation5 + $0xb0] sm:$0xf] }
  0x3c   : > { %404 = vmatpush.bf16.msra.mxu1 %v666_v17  ;;  %v256_v50 = vperm.slane %v253_v49, 1  ;;  %v255_v52 = vperm.slane %v253_v49, 0  ;;  %v723_v61 = vld [vmem:[#allocation5 + $0xb8] sm:$0xf0]  ;;  %v681_v62 = vld [vmem:[#allocation5 + $0x98] sm:$0xf] }
  0x3d   : > { %v694_v63 = vor.u32 %v723_v61, %v693_v60  ;;  %v720_v0 = vld [vmem:[#allocation5 + $0xa0] sm:$0xf0]  ;;  %v669_v2 = vld [vmem:[#allocation5 + $0x80] sm:$0xf]  ;;  %v717_v3 = vld [vmem:[#allocation5 + $0x88] sm:$0xf0] }
  0x3e   : > { %v682_v1 = vor.u32 %v720_v0, %v681_v62  ;;  %v670_v4 = vor.u32 %v717_v3, %v669_v2  ;;  %v657_v5 = vld [vmem:[#allocation5 + $0x68] sm:$0xf]  ;;  %v714_v6 = vld [vmem:[#allocation5 + $0x70] sm:$0xf0]  ;;  %v645_v8 = vld [vmem:[#allocation5 + $0x50] sm:$0xf] }
  0x3f   : > { %392 = vmatpush.bf16.msra.mxu0 %v650_v22  ;;  %415 = vmatpush.bf16.msra.mxu2 %v694_v63  ;;  %v658_v7 = vor.u32 %v714_v6, %v657_v5  ;;  %v711_v9 = vld [vmem:[#allocation5 + $0x58] sm:$0xf0]  ;;  %v633_v11 = vld [vmem:[#allocation5 + $0x38] sm:$0xf]  ;;  %v708_v12 = vld [vmem:[#allocation5 + $0x40] sm:$0xf0] }
  0x40   : > { %405 = vmatpush.bf16.msra.mxu1 %v654_v23  ;;  %v646_v10 = vor.u32 %v711_v9, %v645_v8  ;;  %v634_v13 = vor.u32 %v708_v12, %v633_v11  ;;  %v621_v14 = vld [vmem:[#allocation5 + $0x20] sm:$0xf]  ;;  %v705_v15 = vld [vmem:[#allocation5 + $0x28] sm:$0xf0]  ;;  %vm444_vm0 = vcmask 64512   ;;  %v257_v30 = vperm.slane %v253_v49, 2 }
  0x41   : > { %v622_v16 = vor.u32 %v705_v15, %v621_v14  ;;  %v609_v18 = vld [vmem:[#allocation5 + $0x8] sm:$0xf]  ;;  %v702_v19 = vld [vmem:[#allocation5 + $0x10] sm:$0xf0]  ;;  %vm463_vm1 = vcmask 1043456   ;;  %s697_s20 = sshll.u32 %s1007_s19, 3 }
  0x42   : > { %v610_v21 = vor.u32 %v702_v19, %v609_v18  ;;  %s598_s9 = sshll.u32 %s1083_s10, 3  ;;  %s493_s26 = scalar_lea.hbm %s1138_s3, %s697_s20  ;;  %vm480_vm2 = vcmask 261120  }
  0x43   : > { %393 = vmatpush.bf16.msra.mxu0 %v638_v28  ;;  %416 = vmatpush.bf16.msra.mxu2 %v682_v1  ;;  %s218_s27 = scalar_lea.vmem [#allocation8], %s598_s9  ;;  %s497_s29 = sshll.u32 %s493_s26, 4  ;;  %s498_s29 = int_to_ptr.hbm [resolvable:$true] %s497_s29 }
  0x44   : > { %406 = vmatpush.bf16.msra.mxu1 %v642_v29  ;;  %s495_s28 = sshll.u32 %s218_s27, 4  ;;  %s483_s30 = scalar_lea.sflag [#allocation4], %s1083_s10  ;;  %s496_s28 = int_to_ptr.vmem [resolvable:$true] %s495_s28 }
  0x45   : > { %s901_s5 = sshra.s32 %s498_s29, 4  ;;  %s907_s18 = scalar_lea.hbm %s1138_s3, 16  ;;  %s902_s5 = int_to_ptr.hbm [resolvable:$true] %s901_s5 }
  0x46   : > { %s903_s6 = scalar_lea.hbm %s902_s5, 8  ;;  %p908_p12 = scmp.lt.s32.totalorder %s902_s5, %s1138_s3 }
  0x47   : > { %394 = vmatpush.bf16.msra.mxu0 %v626_v34  ;;  %417 = vmatpush.bf16.msra.mxu2 %v670_v4  ;;  %p904_p1 = scmp.ne.s32.totalorder %s902_s5, %s903_s6  ;;  %p909_p7 = scmp.lt.s32.totalorder %s907_s18, %s903_s6 }
  0x48   : > { %407 = vmatpush.bf16.msra.mxu1 %v630_v35 }
  0x49   : > { %p905_p3 = pnand %p904_p1, %p1052_p4  ;;  %p910_p8 = por %p909_p7, %p908_p12 }
  0x4b   : > { %395 = vmatpush.bf16.msra.mxu0 %v614_v40  ;;  %418 = vmatpush.bf16.msra.mxu2 %v658_v7  ;;  %p906_p5 = pneg %p905_p3 }
  0x4c   : > { %408 = vmatpush.bf16.msra.mxu1 %v618_v41 }
  0x4d   : > { %p911_p9 = pnand %p910_p8, %p906_p5 }
  0x4f   : > { %396 = vmatpush.bf16.msra.mxu0 %v602_v46  ;;  %419 = vmatpush.bf16.msra.mxu2 %v646_v10 }
  0x50   : > { %409 = vmatpush.bf16.msra.mxu1 %v606_v47 }
  0x52   : > { %397 = vmatmul.bf16.vlgmr.msra.gmra.mxu0 %v220_v48 }
  0x53   : > { %410 = vmatmul.bf16.vlgmr.msra.gmra.mxu1 %v220_v48  ;;  %420 = vmatpush.bf16.msra.mxu2 %v634_v13 }
  0x57   : > { %421 = vmatpush.bf16.msra.mxu2 %v622_v16 }
  0x5b   : > { %422 = vmatpush.bf16.msra.mxu2 %v610_v21 }
  0x5e   : > { %423 = vmatmul.bf16.vlgmr.msra.gmra.mxu2 %v220_v48 }
  0xcf   : > { %v398_v51 = vpop.f32.mrf.mxu0 }
  0xd0   : > { %v411_v53 = vpop.f32.mrf.mxu1  ;;  %v399_v56 = vadd.f32 %v398_v51, %v255_v52 }
  0xd1   : > { %v412_v54 = vadd.f32 %v411_v53, %v256_v50 }
  0xd2   : > { %v428_v58 = vpack.c.bf16 %v399_v56, %v399_v56 }
  0xd3   : > { %v429_v55 = vpack.c.bf16 %v412_v54, %v412_v54 }
  0xd5   : > { %438 = vmatpush.bf16.xpose.msra.mxu3 %v429_v55 }
  0xd7   : > { %v400_v57 = vpop.f32.mrf.mxu0 }
  0xd8   : > { %v413_v59 = vpop.f32.mrf.mxu1 }
  0xdc   : > { %439 = vmatmul.bf16.vlgmr.msra.gmra.mxu3 %v428_v58 }
  0xe1   : > { %v424_v28 = vpop.f32.mrf.mxu2 }
  0xe2   : > { %v425_v31 = vadd.f32 %v424_v28, %v257_v30 }
  0xe4   : > { %v430_v32 = vpack.c.bf16 %v425_v31, %v425_v31 }
  0xe6   : > { %v465_v33 = vsel %vm463_vm1, %v430_v32, 0 }
  0xe7   : > { %474 = vmatpush.bf16.msrb.mxu3 %v465_v33 }
  0xe9   : > { %v426_v29 = vpop.f32.mrf.mxu2 }
 0x15f   : > { %v440_v17 = vpop.f32.mrf.mxu3 }
 0x160   : > { %v445_v20 = vsel %vm444_vm0, %v440_v17, -inf }
 0x161   : > { %446 = vmax.xlane.f32.xlu0 %v445_v20 }
 0x167   : > { %v442_v22 = vpop.f32.mrf.mxu3 }
 0x1d4   : > { %v447_v23 = vpop.xlane.xlu0 %446 }
 0x1d5   : > { %v448_v24 = vsub.f32 %v440_v17, %v447_v23 }
 0x1d7   : > { %v449_v25 = vmul.f32 1.442695, %v448_v24 }
 0x1d9   : > { %793 = vpow2.f32 %v449_v25 }
 0x1df   : > { %v794_v26 = vpop.eup %793 }
 0x1e0   : > { %v451_v27 = vsel %vm444_vm0, %v794_v26, 0.0 }
 0x1e1   : > { %452 = vadd.xlane.f32.xlu0 %v451_v27 }
 0x254   : > { %v453_v34 = vpop.xlane.xlu0 %452 }
 0x255   : > { %795 = vrcp.f32 %v453_v34 }
 0x25b   : > { %v796_v35 = vpop.eup %795 }
 0x25c   : > { %v455_v36 = vmul.f32 %v796_v35, %v453_v34 }
 0x25e   : > { %v456_v37 = vsub.f32 2.0, %v455_v36 }
 0x260   : > { %v457_v38 = vmul.f32 %v796_v35, %v456_v37 }
 0x262   : > { %v458_v39 = vmul.f32 %v794_v26, %v457_v38 }
 0x264   : > { %v459_v40 = vpack.c.bf16 %v458_v39, %v458_v39 }
 0x266   : > { %695 = vmatmul.msk.bf16.vlgmr.msrb.gmra.mxu3 %vm444_vm0, %v459_v40 }
 0x2e9   : > { %v476_v41 = vpop.f32.mrf.mxu3 }
 0x2ea   : > { %481 = vst.msk [vmem:[%s218_s27] sm:$0xff] %vm480_vm2, %v476_v41 }
 0x2eb   : > { %914 = shalt.err (!%p911_p9)
}
 0x2ec   : > { %734 = dma.vmem_to_hbm [thread:$0]  (%p1052_p4), %s496_s28, 128, %s498_s29, %s483_s30  }
 0x2f1   : > { %v478_v42 = vpop.f32.mrf.mxu3 }
 0x2f2 PF: > { %s509_s10 = sand.u32 1, %s945_s12   ;;  %p1145_p10 = scmp.ge.s32.totalorder %s957_s15, 2 }
 0x2f3   : > { %s510_s22 = scalar_lea.sflag [#allocation4], %s509_s10 }
 0x2f4   : > { %p748_p13 = pnand %p1145_p10, %p1056_p6 }
 0x2f6   : > { %p749_p11 = pneg %p748_p13 }
 0x2f8   : > { %940 = dma.done.wait (%p749_p11), %s510_s22, 128  }
 0x2f9   : > { %942 = vsyncadd (%p749_p11), %s510_s22, 4294967168  ;;  %p17_p0 = scmp.ge.s32.totalorder %s1026_s4, 4   ;;  %s1146_s12 = smov %s949_s13 }
 0x2fa   : > { %s1147_s13 = smov %s953_s14  ;;  %s1148_s14 = smov %s1037_s7 }
 0x2fb   : > { %s1149_s15 = smov %s1026_s4  ;;  %19 = sbr.rel (!%p17_p0) target bundleno = 6 (0x6), region = 85 }
 0x300   :  { %516 = vsyncpa [#allocation3], 1 }
 0x301   :  { %518 = vsyncpa [#allocation3 + $0x1], 1 }
 0x302   :  { %519 = vsyncpa [#allocation6], 1 }
 0x303   :  { %520 = vsyncpa [#allocation4], 1 }
 0x304   :  { %522 = vsyncpa [#allocation4 + $0x1], 1 }

// kernel: tpu_custom_call.1
= control target key start
LH: loop header
LB: loop body
LE: loop exit
PB: predicated region body
PF: predicated region fallthrough
CT: control target
= control target key end

     0   :  { %8 = vsyncpa [#allocation3], 0  ;;  %s1135_s0 = inlined_call_operand.hbm [shape: bf16[2,8,128], index: 0, kind: input, shape index: {}]   ;;  %s1136_s1 = inlined_call_operand.hbm [shape: bf16[128,384], index: 1, kind: input, shape index: {}]   ;;  %s1137_s2 = inlined_call_operand.hbm [shape: f32[1,384], index: 2, kind: input, shape index: {}]   ;;  %s1138_s3 = inlined_call_operand.hbm [shape: f32[2,8,32], index: 3, kind: output, shape index: {}]  }
   0x1   :  { %10 = vsyncpa [#allocation3 + $0x1], 0 }
   0x2   :  { %11 = vsyncpa [#allocation6], 0 }
   0x3   :  { %12 = vsyncpa [#allocation4], 0 }
   0x4   :  { %14 = vsyncpa [#allocation4 + $0x1], 0  ;;  %s983_s12 = smov 0   ;;  %s985_s13 = smov 0  }
   0x5   :  { %s987_s14 = smov 0   ;;  %s989_s15 = smov 0  }
   0x6 LB: > { %s130_s18 = sshll.u32 %s1136_s1, 4  ;;  %s1007_s19 = sadd.s32 4294967295, %s957_s15   ;;  %s957_s15 = sphi %s989_s15, %s1149_s15   ;;  %s953_s14 = sphi %s987_s14, %s1148_s14   ;;  %s949_s13 = sphi %s985_s13, %s1147_s13   ;;  %s945_s12 = sphi %s983_s12, %s1146_s12   ;;  %s131_s18 = int_to_ptr.hbm [resolvable:$true] %s130_s18 }
   0x7   : > { %p588_p0 = scmp.ge.s32.totalorder %s957_s15, 1  ;;  %p41_p1 = scmp.eq.s32.totalorder %s1007_s19, 0 }
   0x8   : > { %p119_p2 = scmp.lt.s32.totalorder %s957_s15, 3  ;;  %s959_s21 = smov [#allocation5]  }
   0x9   : > { %s132_s22 = sshll.u32 %s959_s21, 4  ;;  %s145_s25 = sshll.u32 %s1137_s2, 4  ;;  %s133_s22 = int_to_ptr.vmem [resolvable:$true] %s132_s22  ;;  %s146_s25 = int_to_ptr.hbm [resolvable:$true] %s145_s25 }
   0xa   : > { %p1012_p3 = pnand %p588_p0, %p119_p2  ;;  %s960_s26 = smov [#allocation7]  }
   0xb   : > { %s147_s27 = sshll.u32 %s960_s26, 4  ;;  %s961_s28 = smov 192   ;;  %s148_s27 = int_to_ptr.vmem [resolvable:$true] %s147_s27 }
   0xc   : > { %p736_p4 = pneg %p1012_p3  ;;  %s962_s29 = smov 12  }
   0xd   : > { %s587_s30 = sadd.s32 4294967294, %s957_s15   ;;  %s1026_s4 = sadd.s32 1, %s957_s15  }
   0xe   : > { %p737_p6 = pnand %p736_p4, %p41_p1  ;;  %s24_s5 = ssub.s32 %s957_s15, %s1026_s4 }
   0xf   : > { %s27_s6 = sadd.s32 1, %s953_s14  ;;  %p25_p7 = scmp.eq.s32.totalorder %s24_s5, 0 }
  0x10   : > { %739 = dma.hbm_to_vmem [thread:$0]  (!%p737_p6), %s131_s18, 3072, %s133_s22, [#allocation6], %s961_s28, %s961_s28, %s962_s29  }
  0x11   : > { %742 = dma.hbm_to_vmem [thread:$0]  (!%p737_p6), %s146_s25, 48, %s148_s27, [#allocation6]  }
  0x12   : > { %p34_p8 = scmp.ne.s32.totalorder %s953_s14, %s949_s13  ;;  %p35_p9 = scmp.eq.s32.totalorder %s957_s15, 0 }
  0x13   : > { %p40_p10 = scmp.ne.s32.totalorder %s949_s13, %s945_s12  ;;  %p106_p13 = scmp.eq.s32.totalorder %s1007_s19, 1 }
  0x14   : > { %s1037_s7 = scalar_select %p25_p7, %s953_s14, %s27_s6  }
  0x15   : > { %p1039_p11 = por %p35_p9, %p34_p8  ;;  %p1045_p12 = por %p41_p1, %p40_p10 }
  0x16   : > { %p112_p0 = scmp.eq.s32.totalorder %s587_s30, 1  ;;  %p753_p2 = scmp.lt.s32.totalorder %s957_s15, 2 }
  0x17   : > { %s158_s10 = sand.u32 1, %s953_s14   ;;  %p1052_p4 = por %p106_p13, %p34_p8 }
  0x18   : > { %p1056_p6 = por %p112_p0, %p40_p10  ;;  %s592_s17 = sshll.u32 %s158_s10, 2 }
  0x19   : > { %s593_s18 = sshll.u32 %s957_s15, 2  ;;  %s162_s24 = scalar_lea.vmem [#allocation2], %s592_s17 }
  0x1a   : > { %s166_s23 = scalar_lea.hbm %s1135_s0, %s593_s18  ;;  %s170_s25 = sshll.u32 %s162_s24, 4  ;;  %s171_s25 = int_to_ptr.vmem [resolvable:$true] %s170_s25 }
  0x1b   : > { %s168_s26 = sshll.u32 %s166_s23, 4  ;;  %p1066_p7 = pnand %p753_p2, %p1039_p11  ;;  %s169_s26 = int_to_ptr.hbm [resolvable:$true] %s168_s26 }
  0x1c   : > { %s159_s28 = scalar_lea.sflag [#allocation3], %s158_s10  ;;  %s857_s29 = sshra.s32 %s169_s26, 4  ;;  %s858_s29 = int_to_ptr.hbm [resolvable:$true] %s857_s29 }
  0x1d   : > { %s859_s30 = scalar_lea.hbm %s858_s29, 4  ;;  %p861_p9 = pneg %p1066_p7 }
  0x1e   : > { %p860_p8 = scmp.ne.s32.totalorder %s858_s29, %s859_s30  ;;  %s864_s17 = scalar_lea.hbm %s1135_s0, 8 }
  0x1f   : > { %p865_p11 = scmp.lt.s32.totalorder %s858_s29, %s1135_s0  ;;  %p866_p0 = scmp.lt.s32.totalorder %s864_s17, %s859_s30 }
  0x20   : > { %p862_p10 = pnand %p861_p9, %p860_p8 }
  0x21   : > { %p867_p2 = por %p866_p0, %p865_p11 }
  0x22   : > { %p863_p13 = pneg %p862_p10 }
  0x24   : > { %p868_p5 = pnand %p867_p2, %p863_p13 }
  0x26   : > { %871 = shalt.err (!%p868_p5)
}
  0x27   : > { %746 = dma.hbm_to_vmem [thread:$0]  (!%p1066_p7), %s169_s26, 64, %s171_s25, %s159_s28  }
  0x28   : > { %179 = sbr.rel (%p1012_p3) target bundleno = 754 (0x2f2), region = 32  ;;  %s1083_s10 = sand.u32 (!%p1012_p3), 1, %s949_s13  }
  0x29   : > { %s595_s21 = sshll.u32 (!%p1012_p3), %s1083_s10, 2  ;;  %s182_s22 = scalar_lea.sflag (!%p1012_p3), [#allocation3], %s1083_s10 }
  0x2a   : > { %s1087_s23 = scalar_lea.vmem (!%p1012_p3), [#allocation2], %s595_s21 }
  0x2d   : > { %932 = dma.done.wait (%p1045_p12), %s182_s22, 64  }
  0x2e   : > { %934 = vsyncadd (%p1045_p12), %s182_s22, 4294967232 }
  0x2f   : > { %936 = dma.done.wait (%p41_p1), [#allocation6], 3120  }
  0x30   : > { %938 = vsyncadd (%p41_p1), [#allocation6], 4294964176  ;;  %v685_v0 = vld [vmem:[#allocation5 + $0xa8] sm:$0xf]  ;;  %v722_v1 = vld [vmem:[#allocation5 + $0xb0] sm:$0xf0] }
  0x31   : > { %v721_v2 = vld [vmem:[#allocation5 + $0xac] sm:$0xf]  ;;  %v686_v3 = vor.u32 %v722_v1, %v685_v0  ;;  %v687_v4 = vld [vmem:[#allocation5 + $0xb4] sm:$0xf0]  ;;  %v673_v5 = vld [vmem:[#allocation5 + $0x90] sm:$0xf] }
  0x32   : > { %v719_v6 = vld [vmem:[#allocation5 + $0x98] sm:$0xf0]  ;;  %v690_v7 = vor.u32 %v721_v2, %v687_v4  ;;  %v718_v8 = vld [vmem:[#allocation5 + $0x94] sm:$0xf]  ;;  %v675_v9 = vld [vmem:[#allocation5 + $0x9c] sm:$0xf0] }
  0x33   : > { %389 = vmatpush.bf16.msra.mxu0 %v686_v3  ;;  %v674_v10 = vor.u32 %v719_v6, %v673_v5  ;;  %v678_v11 = vor.u32 %v718_v8, %v675_v9  ;;  %v661_v12 = vld [vmem:[#allocation5 + $0x78] sm:$0xf]  ;;  %v716_v13 = vld [vmem:[#allocation5 + $0x80] sm:$0xf0]  ;;  %v715_v14 = vld [vmem:[#allocation5 + $0x7c] sm:$0xf] }
  0x34   : > { %402 = vmatpush.bf16.msra.mxu1 %v690_v7  ;;  %v663_v15 = vld [vmem:[#allocation5 + $0x84] sm:$0xf0]  ;;  %v662_v16 = vor.u32 %v716_v13, %v661_v12  ;;  %v649_v18 = vld [vmem:[#allocation5 + $0x60] sm:$0xf]  ;;  %v713_v19 = vld [vmem:[#allocation5 + $0x68] sm:$0xf0] }
  0x35   : > { %v666_v17 = vor.u32 %v715_v14, %v663_v15  ;;  %v712_v20 = vld [vmem:[#allocation5 + $0x64] sm:$0xf]  ;;  %v651_v21 = vld [vmem:[#allocation5 + $0x6c] sm:$0xf0]  ;;  %v650_v22 = vor.u32 %v713_v19, %v649_v18  ;;  %v637_v24 = vld [vmem:[#allocation5 + $0x48] sm:$0xf] }
  0x36   : > { %v654_v23 = vor.u32 %v712_v20, %v651_v21  ;;  %v710_v25 = vld [vmem:[#allocation5 + $0x50] sm:$0xf0]  ;;  %v709_v26 = vld [vmem:[#allocation5 + $0x4c] sm:$0xf]  ;;  %v639_v27 = vld [vmem:[#allocation5 + $0x54] sm:$0xf0] }
  0x37   : > { %390 = vmatpush.bf16.msra.mxu0 %v674_v10  ;;  %v638_v28 = vor.u32 %v710_v25, %v637_v24  ;;  %v642_v29 = vor.u32 %v709_v26, %v639_v27  ;;  %v625_v30 = vld [vmem:[#allocation5 + $0x30] sm:$0xf]  ;;  %v707_v31 = vld [vmem:[#allocation5 + $0x38] sm:$0xf0]  ;;  %v706_v32 = vld [vmem:[#allocation5 + $0x34] sm:$0xf] }
  0x38   : > { %403 = vmatpush.bf16.msra.mxu1 %v678_v11  ;;  %v627_v33 = vld [vmem:[#allocation5 + $0x3c] sm:$0xf0]  ;;  %v626_v34 = vor.u32 %v707_v31, %v625_v30  ;;  %v613_v36 = vld [vmem:[#allocation5 + $0x18] sm:$0xf]  ;;  %v704_v37 = vld [vmem:[#allocation5 + $0x20] sm:$0xf0] }
  0x39   : > { %v630_v35 = vor.u32 %v706_v32, %v627_v33  ;;  %v703_v38 = vld [vmem:[#allocation5 + $0x1c] sm:$0xf]  ;;  %v615_v39 = vld [vmem:[#allocation5 + $0x24] sm:$0xf0]  ;;  %v614_v40 = vor.u32 %v704_v37, %v613_v36  ;;  %v601_v42 = vld [vmem:[#allocation5] sm:$0xf] }
  0x3a   : > { %v618_v41 = vor.u32 %v703_v38, %v615_v39  ;;  %v701_v43 = vld [vmem:[#allocation5 + $0x8] sm:$0xf0]  ;;  %v700_v44 = vld [vmem:[#allocation5 + $0x4] sm:$0xf]  ;;  %v603_v45 = vld [vmem:[#allocation5 + $0xc] sm:$0xf0] }
  0x3b   : > { %391 = vmatpush.bf16.msra.mxu0 %v662_v16  ;;  %v602_v46 = vor.u32 %v701_v43, %v601_v42  ;;  %v606_v47 = vor.u32 %v700_v44, %v603_v45  ;;  %v220_v48 = vld [vmem:[%s1087_s23] sm:$0xf]  ;;  %v253_v49 = vld [vmem:[#allocation7] sm:$0x7]  ;;  %v693_v60 = vld [vmem:[#allocation5 + $0xb0] sm:$0xf] }
  0x3c   : > { %404 = vmatpush.bf16.msra.mxu1 %v666_v17  ;;  %v256_v50 = vperm.slane %v253_v49, 1  ;;  %v255_v52 = vperm.slane %v253_v49, 0  ;;  %v723_v61 = vld [vmem:[#allocation5 + $0xb8] sm:$0xf0]  ;;  %v681_v62 = vld [vmem:[#allocation5 + $0x98] sm:$0xf] }
  0x3d   : > { %v694_v63 = vor.u32 %v723_v61, %v693_v60  ;;  %v720_v0 = vld [vmem:[#allocation5 + $0xa0] sm:$0xf0]  ;;  %v669_v2 = vld [vmem:[#allocation5 + $0x80] sm:$0xf]  ;;  %v717_v3 = vld [vmem:[#allocation5 + $0x88] sm:$0xf0] }
  0x3e   : > { %v682_v1 = vor.u32 %v720_v0, %v681_v62  ;;  %v670_v4 = vor.u32 %v717_v3, %v669_v2  ;;  %v657_v5 = vld [vmem:[#allocation5 + $0x68] sm:$0xf]  ;;  %v714_v6 = vld [vmem:[#allocation5 + $0x70] sm:$0xf0]  ;;  %v645_v8 = vld [vmem:[#allocation5 + $0x50] sm:$0xf] }
  0x3f   : > { %392 = vmatpush.bf16.msra.mxu0 %v650_v22  ;;  %415 = vmatpush.bf16.msra.mxu2 %v694_v63  ;;  %v658_v7 = vor.u32 %v714_v6, %v657_v5  ;;  %v711_v9 = vld [vmem:[#allocation5 + $0x58] sm:$0xf0]  ;;  %v633_v11 = vld [vmem:[#allocation5 + $0x38] sm:$0xf]  ;;  %v708_v12 = vld [vmem:[#allocation5 + $0x40] sm:$0xf0] }
  0x40   : > { %405 = vmatpush.bf16.msra.mxu1 %v654_v23  ;;  %v646_v10 = vor.u32 %v711_v9, %v645_v8  ;;  %v634_v13 = vor.u32 %v708_v12, %v633_v11  ;;  %v621_v14 = vld [vmem:[#allocation5 + $0x20] sm:$0xf]  ;;  %v705_v15 = vld [vmem:[#allocation5 + $0x28] sm:$0xf0]  ;;  %vm444_vm0 = vcmask 64512   ;;  %v257_v30 = vperm.slane %v253_v49, 2 }
  0x41   : > { %v622_v16 = vor.u32 %v705_v15, %v621_v14  ;;  %v609_v18 = vld [vmem:[#allocation5 + $0x8] sm:$0xf]  ;;  %v702_v19 = vld [vmem:[#allocation5 + $0x10] sm:$0xf0]  ;;  %vm463_vm1 = vcmask 1043456   ;;  %s697_s20 = sshll.u32 %s1007_s19, 3 }
  0x42   : > { %v610_v21 = vor.u32 %v702_v19, %v609_v18  ;;  %s598_s9 = sshll.u32 %s1083_s10, 3  ;;  %s493_s26 = scalar_lea.hbm %s1138_s3, %s697_s20  ;;  %vm480_vm2 = vcmask 261120  }
  0x43   : > { %393 = vmatpush.bf16.msra.mxu0 %v638_v28  ;;  %416 = vmatpush.bf16.msra.mxu2 %v682_v1  ;;  %s218_s27 = scalar_lea.vmem [#allocation8], %s598_s9  ;;  %s497_s29 = sshll.u32 %s493_s26, 4  ;;  %s498_s29 = int_to_ptr.hbm [resolvable:$true] %s497_s29 }
  0x44   : > { %406 = vmatpush.bf16.msra.mxu1 %v642_v29  ;;  %s495_s28 = sshll.u32 %s218_s27, 4  ;;  %s483_s30 = scalar_lea.sflag [#allocation4], %s1083_s10  ;;  %s496_s28 = int_to_ptr.vmem [resolvable:$true] %s495_s28 }
  0x45   : > { %s901_s5 = sshra.s32 %s498_s29, 4  ;;  %s907_s18 = scalar_lea.hbm %s1138_s3, 16  ;;  %s902_s5 = int_to_ptr.hbm [resolvable:$true] %s901_s5 }
  0x46   : > { %s903_s6 = scalar_lea.hbm %s902_s5, 8  ;;  %p908_p12 = scmp.lt.s32.totalorder %s902_s5, %s1138_s3 }
  0x47   : > { %394 = vmatpush.bf16.msra.mxu0 %v626_v34  ;;  %417 = vmatpush.bf16.msra.mxu2 %v670_v4  ;;  %p904_p1 = scmp.ne.s32.totalorder %s902_s5, %s903_s6  ;;  %p909_p7 = scmp.lt.s32.totalorder %s907_s18, %s903_s6 }
  0x48   : > { %407 = vmatpush.bf16.msra.mxu1 %v630_v35 }
  0x49   : > { %p905_p3 = pnand %p904_p1, %p1052_p4  ;;  %p910_p8 = por %p909_p7, %p908_p12 }
  0x4b   : > { %395 = vmatpush.bf16.msra.mxu0 %v614_v40  ;;  %418 = vmatpush.bf16.msra.mxu2 %v658_v7  ;;  %p906_p5 = pneg %p905_p3 }
  0x4c   : > { %408 = vmatpush.bf16.msra.mxu1 %v618_v41 }
  0x4d   : > { %p911_p9 = pnand %p910_p8, %p906_p5 }
  0x4f   : > { %396 = vmatpush.bf16.msra.mxu0 %v602_v46  ;;  %419 = vmatpush.bf16.msra.mxu2 %v646_v10 }
  0x50   : > { %409 = vmatpush.bf16.msra.mxu1 %v606_v47 }
  0x52   : > { %397 = vmatmul.bf16.vlgmr.msra.gmra.mxu0 %v220_v48 }
  0x53   : > { %410 = vmatmul.bf16.vlgmr.msra.gmra.mxu1 %v220_v48  ;;  %420 = vmatpush.bf16.msra.mxu2 %v634_v13 }
  0x57   : > { %421 = vmatpush.bf16.msra.mxu2 %v622_v16 }
  0x5b   : > { %422 = vmatpush.bf16.msra.mxu2 %v610_v21 }
  0x5e   : > { %423 = vmatmul.bf16.vlgmr.msra.gmra.mxu2 %v220_v48 }
  0xcf   : > { %v398_v51 = vpop.f32.mrf.mxu0 }
  0xd0   : > { %v411_v53 = vpop.f32.mrf.mxu1  ;;  %v399_v56 = vadd.f32 %v398_v51, %v255_v52 }
  0xd1   : > { %v412_v54 = vadd.f32 %v411_v53, %v256_v50 }
  0xd2   : > { %v428_v58 = vpack.c.bf16 %v399_v56, %v399_v56 }
  0xd3   : > { %v429_v55 = vpack.c.bf16 %v412_v54, %v412_v54 }
  0xd5   : > { %438 = vmatpush.bf16.xpose.msra.mxu3 %v429_v55 }
  0xd7   : > { %v400_v57 = vpop.f32.mrf.mxu0 }
  0xd8   : > { %v413_v59 = vpop.f32.mrf.mxu1 }
  0xdc   : > { %439 = vmatmul.bf16.vlgmr.msra.gmra.mxu3 %v428_v58 }
  0xe1   : > { %v424_v28 = vpop.f32.mrf.mxu2 }
  0xe2   : > { %v425_v31 = vadd.f32 %v424_v28, %v257_v30 }
  0xe4   : > { %v430_v32 = vpack.c.bf16 %v425_v31, %v425_v31 }
  0xe6   : > { %v465_v33 = vsel %vm463_vm1, %v430_v32, 0 }
  0xe7   : > { %474 = vmatpush.bf16.msrb.mxu3 %v465_v33 }
  0xe9   : > { %v426_v29 = vpop.f32.mrf.mxu2 }
 0x15f   : > { %v440_v17 = vpop.f32.mrf.mxu3 }
 0x160   : > { %v445_v20 = vsel %vm444_vm0, %v440_v17, -inf }
 0x161   : > { %446 = vmax.xlane.f32.xlu0 %v445_v20 }
 0x167   : > { %v442_v22 = vpop.f32.mrf.mxu3 }
 0x1d4   : > { %v447_v23 = vpop.xlane.xlu0 %446 }
 0x1d5   : > { %v448_v24 = vsub.f32 %v440_v17, %v447_v23 }
 0x1d7   : > { %v449_v25 = vmul.f32 1.442695, %v448_v24 }
 0x1d9   : > { %793 = vpow2.f32 %v449_v25 }
 0x1df   : > { %v794_v26 = vpop.eup %793 }
 0x1e0   : > { %v451_v27 = vsel %vm444_vm0, %v794_v26, 0.0 }
 0x1e1   : > { %452 = vadd.xlane.f32.xlu0 %v451_v27 }
 0x254   : > { %v453_v34 = vpop.xlane.xlu0 %452 }
 0x255   : > { %795 = vrcp.f32 %v453_v34 }
 0x25b   : > { %v796_v35 = vpop.eup %795 }
 0x25c   : > { %v455_v36 = vmul.f32 %v796_v35, %v453_v34 }
 0x25e   : > { %v456_v37 = vsub.f32 2.0, %v455_v36 }
 0x260   : > { %v457_v38 = vmul.f32 %v796_v35, %v456_v37 }
 0x262   : > { %v458_v39 = vmul.f32 %v794_v26, %v457_v38 }
 0x264   : > { %v459_v40 = vpack.c.bf16 %v458_v39, %v458_v39 }
 0x266   : > { %695 = vmatmul.msk.bf16.vlgmr.msrb.gmra.mxu3 %vm444_vm0, %v459_v40 }
 0x2e9   : > { %v476_v41 = vpop.f32.mrf.mxu3 }
 0x2ea   : > { %481 = vst.msk [vmem:[%s218_s27] sm:$0xff] %vm480_vm2, %v476_v41 }
 0x2eb   : > { %914 = shalt.err (!%p911_p9)
}
 0x2ec   : > { %734 = dma.vmem_to_hbm [thread:$0]  (%p1052_p4), %s496_s28, 128, %s498_s29, %s483_s30  }
 0x2f1   : > { %v478_v42 = vpop.f32.mrf.mxu3 }
 0x2f2 PF: > { %s509_s10 = sand.u32 1, %s945_s12   ;;  %p1145_p10 = scmp.ge.s32.totalorder %s957_s15, 2 }
 0x2f3   : > { %s510_s22 = scalar_lea.sflag [#allocation4], %s509_s10 }
 0x2f4   : > { %p748_p13 = pnand %p1145_p10, %p1056_p6 }
 0x2f6   : > { %p749_p11 = pneg %p748_p13 }
 0x2f8   : > { %940 = dma.done.wait (%p749_p11), %s510_s22, 128  }
 0x2f9   : > { %942 = vsyncadd (%p749_p11), %s510_s22, 4294967168  ;;  %p17_p0 = scmp.ge.s32.totalorder %s1026_s4, 4   ;;  %s1146_s12 = smov %s949_s13 }
 0x2fa   : > { %s1147_s13 = smov %s953_s14  ;;  %s1148_s14 = smov %s1037_s7 }
 0x2fb   : > { %s1149_s15 = smov %s1026_s4  ;;  %19 = sbr.rel (!%p17_p0) target bundleno = 6 (0x6), region = 85 }
 0x300   :  { %516 = vsyncpa [#allocation3], 1 }
 0x301   :  { %518 = vsyncpa [#allocation3 + $0x1], 1 }
 0x302   :  { %519 = vsyncpa [#allocation6], 1 }
 0x303   :  { %520 = vsyncpa [#allocation4], 1 }
 0x304   :  { %522 = vsyncpa [#allocation4 + $0x1], 1 }

</bundles_post_ra>
